<compile_context>
chip_gen: v6e
topology: v6e:2x2x1
jax: 0.10.0
libtpu: 0.0.40
codegen_flags: <defaults>
</compile_context>

<pallas_src>
import functools

import jax
import jax.numpy as jnp
from jax import lax
from jax.experimental import pallas as pl
from jax.experimental.pallas import tpu as pltpu

GAMMA = 2.0
ALPHA = 0.5
IGNORE_INDEX = 255


def _cdiv(a, b):
    return -(-a // b)


def _vmem_budget():
    """(physical VMEM bytes, scoped limit to request) — generation aware."""
    cap = None
    try:
        info = pltpu.get_tpu_info()
        for attr in ("vmem_capacity_bytes", "vmem_bytes", "vmem_size_bytes"):
            v = getattr(info, attr, None)
            if v:
                cap = int(v)
                break
    except Exception:
        cap = None
    if cap is None:
        cap = 64 << 20                      # conservative: v7x per-TC VMEM
    limit = min((cap * 3) // 4, 100 << 20)  # 96 MiB on v5e/v6e, 48 MiB on v7x
    return cap, limit


def _focal_loss_kernel(logits_ref, targets_ref, out_ref, sum_acc, cnt_acc, *,
                       ignore_index, hw, tile, chunk, n_chunks, n_inner,
                       needs_tail):
    oi = pl.program_id(1)
    pi = pl.program_id(2)

    @pl.when(pi == 0)
    def _():
        sum_acc[...] = jnp.zeros_like(sum_acc)
        cnt_acc[...] = jnp.zeros_like(cnt_acc)

    c = logits_ref.shape[1]
    # (c, 1) class-index column; the broadcast to (c, chunk) happens inside the
    # == against the (1, chunk) targets (saves a full-width iota per step).
    cls = lax.broadcasted_iota(jnp.int32, (c, 1), 0)
    if needs_tail:
        lane = lax.broadcasted_iota(jnp.int32, (1, chunk), 1)
        tile_base = (oi * n_inner + pi) * tile

    # Walk the big (c, tile) block in 'chunk'-lane sub-chunks so the f32
    # intermediates stay vreg/VMEM-small regardless of the DMA tile size.
    @pl.loop(0, n_chunks)
    def _(j):
        off = pl.multiple_of(j * chunk, chunk)
        x = logits_ref[0, :, pl.ds(off, chunk)].astype(jnp.float32)  # (c, chunk)
        t = targets_ref[0, :, pl.ds(off, chunk)].astype(jnp.int32)   # (1, chunk)

        # numerically stable log-softmax denominator over the class (sublane) axis
        m = jnp.max(x, axis=0, keepdims=True)
        lse = jnp.log(jnp.sum(jnp.exp(x - m), axis=0, keepdims=True)) + m
        # gather the target-class logit via a one-hot select over sublanes
        logit_t = jnp.sum(jnp.where(cls == t, x, 0.0), axis=0, keepdims=True)
        ce = lse - logit_t                                           # (1, chunk)

        valid = t != ignore_index
        if needs_tail:
            # Only emitted when hw % tile != 0: mask lanes past the true h*w
            # extent.  All pre-mask reductions are per-lane (axis=0), so any
            # garbage in padded lanes never leaks into valid lanes.
            valid = jnp.logical_and(valid, lane < (hw - (tile_base + off)))

        sum_acc[...] += jnp.where(valid, ce, 0.0)
        cnt_acc[...] += valid.astype(jnp.float32)

    @pl.when(pi == pl.num_programs(2) - 1)
    def _():
        total_sum = jnp.sum(sum_acc[...])
        total_cnt = jnp.sum(cnt_acc[...])
        row = lax.broadcasted_iota(jnp.int32, (2, 128), 0)
        out_ref[0, 0] = jnp.where(row == 0, total_sum, total_cnt).astype(out_ref.dtype)


def focal_loss(logits, targets, *, gamma=GAMMA, alpha=ALPHA,
               ignore_index=IGNORE_INDEX, chunk_lanes=1024):
    """logits: (b, c, h, w) float (native dtype); targets: (b, h, w) or (b,1,h,w) int labels."""
    b, c, h, w = logits.shape
    hw = h * w

    # NCHW already has classes ahead of the spatial dims: reshape only, no
    # transpose, no upcast.  Targets keep their native (possibly narrow) dtype;
    # the int32 cast happens in-kernel after the VMEM load.
    logits_3d = logits.reshape(b, c, hw)
    targets_3d = targets.reshape(b, 1, hw)

    vmem_cap, vmem_limit = _vmem_budget()
    logit_isz = jnp.dtype(logits.dtype).itemsize
    tgt_isz = jnp.dtype(targets.dtype).itemsize

    # Per-logits-buffer cap (the pipeline double-buffers each input):
    # ~20 MiB on v5e/v6e (128 MiB physical VMEM), ~10 MiB on v7x (64 MiB/TC).
    per_buf_cap = (20 << 20) if vmem_cap >= (96 << 20) else (10 << 20)
    per_lane_bytes = 2 * c * logit_isz + 2 * tgt_isz   # double-buffered logits+targets
    budget = max(vmem_limit - (6 << 20), 4 << 20)      # scratch/intermediates/headroom
    tile_budget = max(128, min(budget // per_lane_bytes,
                               per_buf_cap // max(c * logit_isz, 1)))

    chunk = max(128, (chunk_lanes // 128) * 128)
    if hw <= chunk:
        tile = hw                       # full-extent block (legal for any size)
        chunk = hw
    else:
        tile = min(tile_budget, hw)
        tile = max(chunk, (tile // chunk) * chunk)
    n_chunks = tile // chunk
    n_tiles = _cdiv(hw, tile)
    needs_tail = (hw % tile) != 0

    # If b == 1 and the tile count is odd, try shrinking the tile so the count
    # becomes even and the outer 'parallel' pixel axis can feed both v7x TCs.
    if b == 1 and n_tiles % 2 == 1 and n_tiles > 1 and tile > chunk:
        half = max(chunk, ((tile // 2) // chunk) * chunk)
        if _cdiv(hw, half) % 2 == 0:
            tile = half
            n_chunks = tile // chunk
            n_tiles = _cdiv(hw, tile)
            needs_tail = (hw % tile) != 0
    n_outer = 2 if (n_tiles >= 2 and n_tiles % 2 == 0) else 1
    n_inner = n_tiles // n_outer

    kernel = functools.partial(
        _focal_loss_kernel, ignore_index=ignore_index, hw=hw, tile=tile,
        chunk=chunk, n_chunks=n_chunks, n_inner=n_inner, needs_tail=needs_tail)

    cost = pl.CostEstimate(
        flops=6 * b * c * hw,
        transcendentals=b * c * hw,
        bytes_accessed=b * hw * (c * logit_isz + tgt_isz) + b * n_outer * 2 * 128 * 4)

    partials = pl.pallas_call(
        kernel,
        out_shape=jax.ShapeDtypeStruct((b, n_outer, 2, 128), jnp.float32),
        grid_spec=pltpu.PrefetchScalarGridSpec(
            num_scalar_prefetch=0,
            grid=(b, n_outer, n_inner),
            in_specs=[
                pl.BlockSpec((1, c, tile), lambda bi, oi, pi: (bi, 0, oi * n_inner + pi)),
                pl.BlockSpec((1, 1, tile), lambda bi, oi, pi: (bi, 0, oi * n_inner + pi)),
            ],
            out_specs=pl.BlockSpec((1, 1, 2, 128), lambda bi, oi, pi: (bi, oi, 0, 0)),
            scratch_shapes=[
                pltpu.VMEM((1, chunk), jnp.float32),   # per-lane CE partial sums
                pltpu.VMEM((1, chunk), jnp.float32),   # per-lane valid counts
            ],
        ),
        compiler_params=pltpu.CompilerParams(
            dimension_semantics=("parallel", "parallel", "arbitrary"),
            vmem_limit_bytes=int(vmem_limit)),
        cost_estimate=cost,
    )(logits_3d, targets_3d)

    # Combine per-(batch, outer-chunk) partials into the focal-loss scalar.
    total_sum = jnp.sum(partials[:, :, 0, 0])
    total_cnt = jnp.sum(partials[:, :, 1, 0])
    # NOTE: all-ignored input yields NaN here, exactly like nn.CrossEntropyLoss.
    logpt = total_sum / total_cnt          # mean CE over non-ignored pixels
    pt = jnp.exp(-logpt)
    return alpha * (1.0 - pt) ** gamma * logpt


def _focal_loss_ref(logits, targets, *, gamma=GAMMA, alpha=ALPHA,
                    ignore_index=IGNORE_INDEX):
    b, c, h, w = logits.shape
    x = jnp.transpose(logits, (0, 2, 3, 1)).reshape(-1, c).astype(jnp.float32)
    t = targets.reshape(-1).astype(jnp.int32)
    logp = jax.nn.log_softmax(x, axis=-1)
    ce = -jnp.take_along_axis(logp, jnp.clip(t, 0, c - 1)[:, None], axis=-1)[:, 0]
    valid = t != ignore_index
    logpt = jnp.sum(jnp.where(valid, ce, 0.0)) / jnp.sum(valid)
    pt = jnp.exp(-logpt)
    return alpha * (1.0 - pt) ** gamma * logpt


if __name__ == "__main__":
    key = jax.random.PRNGKey(0)
    k1, k2, k3 = jax.random.split(key, 3)

    B, C, H, W = 2, 4, 16, 16
    logits = jax.random.normal(k1, (B, C, H, W), dtype=jnp.float32)
    targets = jax.random.randint(k2, (B, H, W), 0, C, dtype=jnp.int32)
    # sprinkle some ignored pixels
    ignore_mask = jax.random.bernoulli(k3, 0.1, (B, H, W))
    targets = jnp.where(ignore_mask, IGNORE_INDEX, targets)

    loss = focal_loss(logits, targets)
    jax.block_until_ready(loss)

    ref = _focal_loss_ref(logits, targets)
    assert jnp.allclose(loss, ref, rtol=1e-5, atol=1e-6), (loss, ref)

    print("KERNEL_OK")
</pallas_src>

<mosaic_0001>
module attributes {stable_mosaic.version = 11 : i64} {
  func.func @_focal_loss_kernel(%arg0: i32, %arg1: i32, %arg2: i32, %arg3: memref<1x4x256xf32, #tpu.memory_space<vmem>>, %arg4: memref<1x1x256xi32, #tpu.memory_space<vmem>>, %arg5: memref<1x1x2x128xf32, #tpu.memory_space<vmem>>, %arg6: memref<1x256xf32, #tpu.memory_space<vmem>>, %arg7: memref<1x256xf32, #tpu.memory_space<vmem>>) attributes {dimension_semantics = [#tpu.dimension_semantics<parallel>, #tpu.dimension_semantics<parallel>, #tpu.dimension_semantics<arbitrary>], iteration_bounds = array<i64: 2, 1, 1>, scalar_prefetch = 0 : i64, scratch_operands = 2 : i64, tpu.core_type = #tpu.core_type<tc>, window_params = [{transform_indices = @transform_0, window_bounds = array<i64: 1, 4, 256>}, {transform_indices = @transform_1, window_bounds = array<i64: 1, 1, 256>}, {transform_indices = @transform_2, window_bounds = array<i64: 1, 1, 2, 128>}]} {
    %c0_i32 = arith.constant 0 : i32
    %0 = arith.cmpi eq, %arg2, %c0_i32 : i32
    %1 = arith.extui %0 : i1 to i32
    %c0_i32_0 = arith.constant 0 : i32
    %2 = arith.cmpi ne, %1, %c0_i32_0 : i32
    scf.if %2 {
      %cst_21 = arith.constant 0.000000e+00 : f32
      %46 = vector.broadcast %cst_21 : f32 to vector<1x256xf32>
      %c0_22 = arith.constant 0 : index
      %c0_23 = arith.constant 0 : index
      %47 = vector.load %arg6[%c0_22, %c0_23] : memref<1x256xf32, #tpu.memory_space<vmem>>, vector<1x256xf32>
      tpu.vector_store %arg6[%c0_22, %c0_23], %46 {strides = array<i32>} : memref<1x256xf32, #tpu.memory_space<vmem>>, vector<1x256xf32>,
      %cst_24 = arith.constant 0.000000e+00 : f32
      %48 = vector.broadcast %cst_24 : f32 to vector<1x256xf32>
      %c0_25 = arith.constant 0 : index
      %c0_26 = arith.constant 0 : index
      %49 = vector.load %arg7[%c0_25, %c0_26] : memref<1x256xf32, #tpu.memory_space<vmem>>, vector<1x256xf32>
      tpu.vector_store %arg7[%c0_25, %c0_26], %48 {strides = array<i32>} : memref<1x256xf32, #tpu.memory_space<vmem>>, vector<1x256xf32>,
    } else {
    }
    %3 = tpu.iota {dimensions = array<i32: 0>} : vector<4x1xi32>
    %c0_i32_1 = arith.constant 0 : i32
    %c1_i32 = arith.constant 1 : i32
    %4 = arith.muli %c0_i32_1, %c1_i32 : i32
    %c0_i32_2 = arith.constant 0 : i32
    %5 = arith.addi %c0_i32_2, %4 : i32
    %c256_i32 = arith.constant 256 : i32
    %6 = arith.muli %5, %c256_i32 : i32
    %7 = tpu.assume_multiple %6, 256 : i32
    %c0 = arith.constant 0 : index
    %c0_3 = arith.constant 0 : index
    %8 = arith.index_cast %7 : i32 to index
    %9 = vector.load %arg3[%c0, %c0_3, %8] : memref<1x4x256xf32, #tpu.memory_space<vmem>>, vector<1x4x256xf32>
    %10 = vector.shape_cast %9 : vector<1x4x256xf32> to vector<4x256xf32>
    %c0_4 = arith.constant 0 : index
    %c0_5 = arith.constant 0 : index
    %11 = arith.index_cast %7 : i32 to index
    %12 = vector.load %arg4[%c0_4, %c0_5, %11] : memref<1x1x256xi32, #tpu.memory_space<vmem>>, vector<1x1x256xi32>
    %13 = vector.shape_cast %12 : vector<1x1x256xi32> to vector<1x256xi32>
    %cst = arith.constant dense<0xFF800000> : vector<256xf32>
    %14 = vector.multi_reduction <maximumf>, %10, %cst [0] : vector<4x256xf32> to vector<256xf32>
    %15 = vector.shape_cast %14 : vector<256xf32> to vector<1x256xf32>
    %16 = vector.broadcast %15 : vector<1x256xf32> to vector<4x256xf32>
    %17 = arith.subf %10, %16 : vector<4x256xf32>
    %18 = math.exp %17 : vector<4x256xf32>
    %cst_6 = arith.constant dense<0.000000e+00> : vector<256xf32>
    %19 = vector.multi_reduction <add>, %18, %cst_6 [0] : vector<4x256xf32> to vector<256xf32>
    %20 = vector.shape_cast %19 : vector<256xf32> to vector<1x256xf32>
    %21 = math.log %20 : vector<1x256xf32>
    %22 = arith.addf %21, %15 : vector<1x256xf32>
    %23 = vector.broadcast %3 : vector<4x1xi32> to vector<4x256xi32>
    %24 = vector.broadcast %13 : vector<1x256xi32> to vector<4x256xi32>
    %25 = arith.cmpi eq, %23, %24 : vector<4x256xi32>
    %cst_7 = arith.constant 0.000000e+00 : f32
    %26 = vector.broadcast %cst_7 : f32 to vector<4x256xf32>
    %27 = arith.select %25, %10, %26 : vector<4x256xi1>, vector<4x256xf32>
    %cst_8 = arith.constant dense<0.000000e+00> : vector<256xf32>
    %28 = vector.multi_reduction <add>, %27, %cst_8 [0] : vector<4x256xf32> to vector<256xf32>
    %29 = vector.shape_cast %28 : vector<256xf32> to vector<1x256xf32>
    %30 = arith.subf %22, %29 : vector<1x256xf32>
    %c255_i32 = arith.constant 255 : i32
    %31 = vector.broadcast %c255_i32 : i32 to vector<1x256xi32>
    %32 = arith.cmpi ne, %13, %31 : vector<1x256xi32>
    %c0_9 = arith.constant 0 : index
    %c0_10 = arith.constant 0 : index
    %33 = vector.load %arg6[%c0_9, %c0_10] : memref<1x256xf32, #tpu.memory_space<vmem>>, vector<1x256xf32>
    %cst_11 = arith.constant 0.000000e+00 : f32
    %34 = vector.broadcast %cst_11 : f32 to vector<1x256xf32>
    %35 = arith.select %32, %30, %34 : vector<1x256xi1>, vector<1x256xf32>
    %36 = arith.addf %33, %35 : vector<1x256xf32>
    %c0_12 = arith.constant 0 : index
    %c0_13 = arith.constant 0 : index
    %37 = vector.load %arg6[%c0_12, %c0_13] : memref<1x256xf32, #tpu.memory_space<vmem>>, vector<1x256xf32>
    tpu.vector_store %arg6[%c0_12, %c0_13], %36 {strides = array<i32>} : memref<1x256xf32, #tpu.memory_space<vmem>>, vector<1x256xf32>,
    %c0_14 = arith.constant 0 : index
    %c0_15 = arith.constant 0 : index
    %38 = vector.load %arg7[%c0_14, %c0_15] : memref<1x256xf32, #tpu.memory_space<vmem>>, vector<1x256xf32>
    %39 = arith.extui %32 : vector<1x256xi1> to vector<1x256xi32>
    %40 = arith.sitofp %39 : vector<1x256xi32> to vector<1x256xf32>
    %41 = arith.addf %38, %40 : vector<1x256xf32>
    %c0_16 = arith.constant 0 : index
    %c0_17 = arith.constant 0 : index
    %42 = vector.load %arg7[%c0_16, %c0_17] : memref<1x256xf32, #tpu.memory_space<vmem>>, vector<1x256xf32>
    tpu.vector_store %arg7[%c0_16, %c0_17], %41 {strides = array<i32>} : memref<1x256xf32, #tpu.memory_space<vmem>>, vector<1x256xf32>,
    %c1_i32_18 = arith.constant 1 : i32
    %c0_i32_19 = arith.constant 0 : i32
    %43 = arith.cmpi eq, %arg2, %c0_i32_19 : i32
    %44 = arith.extui %43 : i1 to i32
    %c0_i32_20 = arith.constant 0 : i32
    %45 = arith.cmpi ne, %44, %c0_i32_20 : i32
    scf.if %45 {
      %c0_21 = arith.constant 0 : index
      %c0_22 = arith.constant 0 : index
      %46 = vector.load %arg6[%c0_21, %c0_22] : memref<1x256xf32, #tpu.memory_space<vmem>>, vector<1x256xf32>
      %47 = vector.shape_cast %46 : vector<1x256xf32> to vector<1x1x256xf32>
      %cst_23 = arith.constant dense<0.000000e+00> : vector<1xf32>
      %48 = vector.multi_reduction <add>, %47, %cst_23 [1, 2] : vector<1x1x256xf32> to vector<1xf32>
      %49 = vector.shape_cast %48 : vector<1xf32> to vector<1x1x1xf32>
      %50 = vector.extract %49[0, 0, 0] : f32 from vector<1x1x1xf32>
      %c0_24 = arith.constant 0 : index
      %c0_25 = arith.constant 0 : index
      %51 = vector.load %arg7[%c0_24, %c0_25] : memref<1x256xf32, #tpu.memory_space<vmem>>, vector<1x256xf32>
      %52 = vector.shape_cast %51 : vector<1x256xf32> to vector<1x1x256xf32>
      %cst_26 = arith.constant dense<0.000000e+00> : vector<1xf32>
      %53 = vector.multi_reduction <add>, %52, %cst_26 [1, 2] : vector<1x1x256xf32> to vector<1xf32>
      %54 = vector.shape_cast %53 : vector<1xf32> to vector<1x1x1xf32>
      %55 = vector.extract %54[0, 0, 0] : f32 from vector<1x1x1xf32>
      %56 = tpu.iota {dimensions = array<i32: 0>} : vector<2x128xi32>
      %c0_i32_27 = arith.constant 0 : i32
      %57 = vector.broadcast %c0_i32_27 : i32 to vector<2x128xi32>
      %58 = arith.cmpi eq, %56, %57 : vector<2x128xi32>
      %59 = vector.broadcast %50 : f32 to vector<2x128xf32>
      %60 = vector.broadcast %55 : f32 to vector<2x128xf32>
      %61 = arith.select %58, %59, %60 : vector<2x128xi1>, vector<2x128xf32>
      %c0_28 = arith.constant 0 : index
      %c0_29 = arith.constant 0 : index
      %c0_30 = arith.constant 0 : index
      %c0_31 = arith.constant 0 : index
      %62 = vector.load %arg5[%c0_28, %c0_29, %c0_30, %c0_31] : memref<1x1x2x128xf32, #tpu.memory_space<vmem>>, vector<1x1x2x128xf32>
      %63 = vector.shape_cast %62 : vector<1x1x2x128xf32> to vector<2x128xf32>
      %64 = vector.shape_cast %61 : vector<2x128xf32> to vector<1x1x2x128xf32>
      tpu.vector_store %arg5[%c0_28, %c0_29, %c0_30, %c0_31], %64 {strides = array<i32>} : memref<1x1x2x128xf32, #tpu.memory_space<vmem>>, vector<1x1x2x128xf32>,
    } else {
    }
    return
  }
  func.func @transform_0(%arg0: i32, %arg1: i32, %arg2: i32) -> (i32, i32, i32) {
    %c1_i32 = arith.constant 1 : i32
    %0 = arith.muli %arg1, %c1_i32 : i32
    %1 = arith.addi %0, %arg2 : i32
    %c0_i32 = arith.constant 0 : i32
    %c0_i32_0 = arith.constant 0 : i32
    return %arg0, %c0_i32, %1 : i32, i32, i32
  }
  func.func @transform_1(%arg0: i32, %arg1: i32, %arg2: i32) -> (i32, i32, i32) {
    %c1_i32 = arith.constant 1 : i32
    %0 = arith.muli %arg1, %c1_i32 : i32
    %1 = arith.addi %0, %arg2 : i32
    %c0_i32 = arith.constant 0 : i32
    %c0_i32_0 = arith.constant 0 : i32
    return %arg0, %c0_i32, %1 : i32, i32, i32
  }
  func.func @transform_2(%arg0: i32, %arg1: i32, %arg2: i32) -> (i32, i32, i32, i32) {
    %c0_i32 = arith.constant 0 : i32
    %c0_i32_0 = arith.constant 0 : i32
    %c0_i32_1 = arith.constant 0 : i32
    return %arg0, %arg1, %c0_i32, %c0_i32_0 : i32, i32, i32, i32
  }
}

</mosaic_0001>

<bundles_post_ra>
// kernel: tpu_custom_call.1
= control target key start
LH: loop header
LB: loop body
LE: loop exit
PB: predicated region body
PF: predicated region fallthrough
CT: control target
= control target key end

     0   :  { %7 = vsyncpa [#allocation5], 0  ;;  %s1026_s0 = inlined_call_operand.hbm [shape: f32[2,4,256], index: 0, kind: input, shape index: {}]   ;;  %s1027_s1 = inlined_call_operand.hbm [shape: s32[2,1,256], index: 1, kind: input, shape index: {}]   ;;  %s1028_s2 = inlined_call_operand.hbm [shape: f32[2,1,2,128], index: 2, kind: output, shape index: {}]  }
   0x1   :  { %9 = vsyncpa [#allocation5 + $0x1], 0 }
   0x2   :  { %10 = vsyncpa [#allocation8], 0 }
   0x3   :  { %12 = vsyncpa [#allocation8 + $0x1], 0 }
   0x4   :  { %13 = vsyncpa [#allocation6], 0 }
   0x5   :  { %15 = vsyncpa [#allocation6 + $0x1], 0  ;;  %s807_s9 = smov 0   ;;  %s809_s10 = smov 0  }
   0x6   :  { %s811_s11 = smov 0   ;;  %s813_s12 = smov 0  }
   0x7   :  { %s815_s13 = smov 0   ;;  %s817_s14 = smov 0  }
   0x8 LB: > { %s544_s15 = sadd.s32 4294967295, %s785_s14   ;;  %s545_s16 = sadd.s32 4294967294, %s785_s14   ;;  %s785_s14 = sphi %s817_s14, %s21_s14   ;;  %s781_s13 = sphi %s815_s13, %s1042_s13   ;;  %s777_s12 = sphi %s813_s12, %s1041_s12   ;;  %s773_s11 = sphi %s811_s11, %s1040_s11   ;;  %s769_s10 = sphi %s809_s10, %s1039_s10   ;;  %s765_s9 = sphi %s807_s9, %s1038_s9  }
   0x9   : > { %s40_s17 = sadd.s32 1, %s781_s13  ;;  %s51_s18 = sadd.s32 1, %s773_s11 }
   0xa   : > { %p42_p0 = scmp.ge.s32.totalorder %s40_s17, 2  ;;  %p58_p1 = scmp.ne.s32.totalorder %s773_s11, %s769_s10 }
   0xb   : > { %p59_p2 = scmp.eq.s32.totalorder %s785_s14, 0  ;;  %p64_p3 = scmp.ne.s32.totalorder %s769_s10, %s765_s9 }
   0xc   : > { %s1044_s17 = smov (%p42_p0, %s40_s17), 0  ;;  %p65_p5 = scmp.eq.s32.totalorder %s544_s15, 0 }
   0xd   : > { %p848_p4 = por %p59_p2, %p58_p1  ;;  %s46_s20 = ssub.s32 %s781_s13, %s1044_s17 }
   0xe   : > { %p120_p6 = scmp.eq.s32.totalorder %s544_s15, 1  ;;  %p49_p7 = scmp.eq.s32.totalorder %s46_s20, 0 }
   0xf   : > { %p854_p8 = por %p65_p5, %p64_p3  ;;  %p126_p10 = scmp.eq.s32.totalorder %s545_s16, 1 }
  0x10   : > { %p858_p9 = por %p120_p6, %p58_p1  ;;  %p586_p13 = scmp.lt.s32.totalorder %s785_s14, 2 }
  0x11   : > { %s863_s23 = scalar_select %p49_p7, %s773_s11, %s51_s18  }
  0x12   : > { %p865_p11 = por %p126_p10, %p64_p3  ;;  %s872_s25 = sand.u32 1, %s773_s11  }
  0x13   : > { %s548_s26 = sshll.u32 %s872_s25, 3  ;;  %s563_s27 = sshll.u32 %s781_s13, 7 }
  0x14   : > { %s159_s30 = scalar_lea.hbm %s1026_s0, %s563_s27  ;;  %s150_s3 = scalar_lea.vmem [#allocation4], %s548_s26 }
  0x15   : > { %s161_s4 = sshll.u32 %s150_s3, 4  ;;  %p881_p0 = pnand %p586_p13, %p848_p4  ;;  %s162_s4 = int_to_ptr.vmem [resolvable:$true] %s161_s4 }
  0x16   : > { %p554_p1 = scmp.ge.s32.totalorder %s785_s14, 1  ;;  %p188_p2 = scmp.lt.s32.totalorder %s785_s14, 3 }
  0x17   : > { %s147_s6 = scalar_lea.sflag [#allocation5], %s872_s25  ;;  %p647_p3 = pneg %p881_p0 }
  0x18   : > { %s658_s7 = scalar_lea.vmem %s162_s4, 128  ;;  %s787_s8 = smov [#allocation4]  }
  0x19   : > { %p659_p5 = scmp.ne.s32.totalorder %s162_s4, %s658_s7  ;;  %s663_s15 = sshll.u32 %s787_s8, 4  ;;  %s664_s15 = int_to_ptr.vmem [resolvable:$false] %s663_s15 }
  0x1a   : > { %s665_s16 = scalar_lea.vmem %s664_s15, 256  ;;  %p666_p4 = scmp.lt.s32.totalorder %s162_s4, %s664_s15 }
  0x1b   : > { %p661_p6 = pnand %p659_p5, %p647_p3  ;;  %p667_p10 = scmp.lt.s32.totalorder %s665_s16, %s658_s7 }
  0x1d   : > { %p662_p7 = pneg %p661_p6  ;;  %p668_p13 = por %p667_p10, %p666_p4 }
  0x1f   : > { %p669_p12 = pnand %p668_p13, %p662_p7 }
  0x21   : > { %672 = shalt.err (!%p669_p12)
}
  0x22   : > { %578 = dma.hbm_to_vmem [thread:$0]  (!%p881_p0), %s159_s30, 128, %s162_s4, %s147_s6  }
  0x23   : > { %p899_p5 = pnand %p554_p1, %p188_p2  ;;  %s551_s19 = sshll.u32 %s872_s25, 1 }
  0x24   : > { %s564_s20 = sshll.u32 %s781_s13, 5  ;;  %s172_s29 = scalar_lea.vmem [#allocation7], %s551_s19 }
  0x25   : > { %s181_s28 = scalar_lea.hbm %s1027_s1, %s564_s20  ;;  %s183_s3 = sshll.u32 %s172_s29, 4  ;;  %s184_s3 = int_to_ptr.vmem [resolvable:$true] %s183_s3 }
  0x26   : > { %s169_s7 = scalar_lea.sflag [#allocation8], %s872_s25  ;;  %s686_s8 = scalar_lea.vmem %s184_s3, 32 }
  0x27   : > { %p687_p12 = scmp.ne.s32.totalorder %s184_s3, %s686_s8  ;;  %s788_s30 = smov [#allocation7]  }
  0x28   : > { %s691_s4 = sshll.u32 %s788_s30, 4  ;;  %s692_s4 = int_to_ptr.vmem [resolvable:$false] %s691_s4 }
  0x29   : > { %p689_p6 = pnand %p687_p12, %p647_p3  ;;  %s693_s6 = scalar_lea.vmem %s692_s4, 64 }
  0x2a   : > { %p694_p1 = scmp.lt.s32.totalorder %s184_s3, %s692_s4  ;;  %p695_p2 = scmp.lt.s32.totalorder %s693_s6, %s686_s8 }
  0x2b   : > { %p690_p7 = pneg %p689_p6 }
  0x2c   : > { %p696_p4 = por %p695_p2, %p694_p1 }
  0x2e   : > { %p697_p10 = pnand %p696_p4, %p690_p7 }
  0x30   : > { %700 = shalt.err (!%p697_p10)
}
  0x31   : > { %581 = dma.hbm_to_vmem [thread:$0]  (!%p881_p0), %s181_s28, 32, %s184_s3, %s169_s7  }
  0x32   : > { %192 = sbr.rel (%p899_p5) target bundleno = 371 (0x173), region = 28  ;;  %s917_s25 = sand.u32 (!%p899_p5), 1, %s769_s10  }
  0x33   : > { %s555_s15 = sshll.u32 (!%p899_p5), %s917_s25, 3  ;;  %s195_s16 = scalar_lea.sflag (!%p899_p5), [#allocation5], %s917_s25 }
  0x34   : > { %s198_s19 = scalar_lea.vmem (!%p899_p5), [#allocation4], %s555_s15 }
  0x37   : > { %752 = dma.done.wait (%p854_p8), %s195_s16, 128  }
  0x38   : > { %754 = vsyncadd (%p854_p8), %s195_s16, 4294967168  ;;  %s556_s5 = sshll.u32 %s917_s25, 1  ;;  %s204_s18 = scalar_lea.sflag [#allocation8], %s917_s25 }
  0x39   : > { %s207_s20 = scalar_lea.vmem [#allocation7], %s556_s5 }
  0x3a   : > { %756 = dma.done.wait (%p854_p8), %s204_s18, 32  }
  0x3b   : > { %758 = vsyncadd (%p854_p8), %s204_s18, 4294967264  ;;  %v241_v0 = vlaneseq  ;;  %v789_v2 = vmov 0.0   ;;  %vm254_vm1 = vcmask 1043456   ;;  %v249_v3 = vld [vmem:[%s198_s19] sm:$0xff]  ;;  %v941_v4 = vld [vmem:[%s207_s20] sm:$0x3] }
  0x3c   : > { %v252_v5 = vcombine.high %v249_v3, %v249_v3  ;;  %v255_v6 = vsel %vm254_vm1, %v249_v3, -inf  ;;  %vm327_vm2 = vcmp.ne.s32.totalorder %v941_v4, 255  ;;  %v790_v61 = vmov 1966171168   ;;  %s560_s21 = sshll.u32 %s777_s12, 5  ;;  %s232_s27 = scalar_lea.vmem [#allocation9], %s556_s5 }
  0x3d   : > { %vm933_vm0 = vcmp.lt.s32.totalorder %v241_v0, 256  ;;  %v256_v7 = vrot.slane %v255_v6, 4  ;;  %v558_v10 = vsel %vm327_vm2, 1.0, %v789_v2  ;;  %v950_v26 = vshrl.u32 %v241_v0, 7  ;;  %s431_s28 = sshll.u32 %s232_s27, 4  ;;  %s984_s8 = scalar_lea.hbm %s1028_s2, %s560_s21  ;;  %s432_s28 = int_to_ptr.vmem [resolvable:$true] %s431_s28 }
  0x3e   : > { %245 = vst.msk [vmem:[#allocation2] sm:$0x3] %vm933_vm0, %v789_v2  ;;  %246 = vst.msk [vmem:[#allocation3] sm:$0x3] %vm933_vm0, %v789_v2  ;;  %v262_v8 = vsel %vm254_vm1, %v252_v5, -inf  ;;  %v333_v62 = vunpack.c.l.s4 %v790_v61  ;;  %vm374_vm5 = vcmask 1040384  }
  0x3f   : > { %v257_v11 = vmax.f32 %v255_v6, %v256_v7  ;;  %v263_v12 = vrot.slane %v262_v8, 4  ;;  %v953_v27 = vsub.s32 0, %v950_v26  ;;  %v956_v28 = vsub.s32 1, %v950_v26  ;;  %s417_s30 = scalar_lea.sflag [#allocation6], %s917_s25  ;;  %s701_s4 = scalar_lea.vmem %s432_s28, 32 }
  0x40   : > { %vm411_vm6 = vcmp.eq.s32.totalorder %v950_v26, 0  ;;  %p702_p8 = scmp.ne.s32.totalorder %s432_s28, %s701_s4  ;;  %s791_s12 = smov [#allocation9]  }
  0x41   : > { %v258_v14 = vrot.slane %v257_v11, 2  ;;  %v264_v15 = vmax.f32 %v262_v8, %v263_v12  ;;  %v302_v29 = vrot.slane %v941_v4, %v953_v27  ;;  %v306_v30 = vrot.slane %v941_v4, %v956_v28  ;;  %s705_s6 = sshll.u32 %s791_s12, 4  ;;  %s706_s6 = int_to_ptr.vmem [resolvable:$false] %s705_s6 }
  0x42   : > { %v334_v8 = vunpack.c.0.s8 %v333_v62  ;;  %p703_p0 = pnand %p702_p8, %p858_p9  ;;  %s707_s15 = scalar_lea.vmem %s706_s6, 64 }
  0x43   : > { %v259_v16 = vmax.f32 %v257_v11, %v258_v14  ;;  %v265_v17 = vrot.slane %v264_v15, 2  ;;  %vm307_vm3 = vcmp.eq.s32.totalorder %v950_v26, %v302_v29  ;;  %vm308_vm4 = vcmp.eq.s32.totalorder %v950_v26, %v306_v30  ;;  %p708_p13 = scmp.lt.s32.totalorder %s432_s28, %s706_s6  ;;  %p709_p5 = scmp.lt.s32.totalorder %s707_s15, %s701_s4 }
  0x44   : > { %v309_v35 = vsel %vm307_vm3, %v249_v3, 0.0  ;;  %v310_v39 = vsel %vm308_vm4, %v252_v5, 0.0  ;;  %v337_v12 = vsub.s32 %v334_v8, %v950_v26  ;;  %p704_p3 = pneg %p703_p0 }
  0x45   : > { %v354_v9 = vld [vmem:[#allocation3] sm:$0x3]  ;;  %v260_v18 = vrot.slane %v259_v16, 1  ;;  %v266_v19 = vmax.f32 %v264_v15, %v265_v17  ;;  %v311_v40 = vsel %vm254_vm1, %v309_v35, 0.0  ;;  %v318_v43 = vsel %vm254_vm1, %v310_v39, 0.0  ;;  %p710_p12 = por %p709_p5, %p708_p13 }
  0x46   : > { %v357_v13 = vadd.f32 %v558_v10, %v354_v9  ;;  %v312_v46 = vrot.slane %v311_v40, 4  ;;  %v319_v49 = vrot.slane %v318_v43, 4  ;;  %v328_v15 = vld [vmem:[#allocation2] sm:$0x3] }
  0x47   : > { %v261_v20 = vmax.f32 %v259_v16, %v260_v18  ;;  %v267_v21 = vrot.slane %v266_v19, 1  ;;  %p711_p6 = pnand %p710_p12, %p704_p3 }
  0x48   : > { %358 = vst.msk [vmem:[#allocation3] sm:$0x3] %vm933_vm0, %v357_v13  ;;  %v313_v52 = vadd.f32 %v312_v46, %v311_v40  ;;  %v320_v54 = vadd.f32 %v319_v49, %v318_v43 }
  0x49   : > { %v268_v22 = vmax.f32 %v266_v19, %v267_v21 }
  0x4a   : > { %v314_v55 = vrot.slane %v313_v52, 2  ;;  %v321_v56 = vrot.slane %v320_v54, 2 }
  0x4b   : > { %v271_v23 = vcombine.low %v261_v20, %v268_v22 }
  0x4c   : > { %v315_v57 = vadd.f32 %v314_v55, %v313_v52  ;;  %v322_v58 = vadd.f32 %v321_v56, %v320_v54 }
  0x4d   : > { %v273_v24 = vsub.f32 %v249_v3, %v271_v23 }
  0x4e   : > { %v316_v59 = vrot.slane %v315_v57, 1  ;;  %v323_v60 = vrot.slane %v322_v58, 1 }
  0x4f   : > { %v274_v25 = vmul.f32 1.442695, %v273_v24  ;;  %v387_v19 = vld [vmem:[#allocation3] sm:$0x3] }
  0x50   : > { %v317_v2 = vadd.f32 %v316_v59, %v315_v57  ;;  %v324_v7 = vadd.f32 %v323_v60, %v322_v58  ;;  %v396_v21 = vrot.slane %v387_v19, %v956_v28 }
  0x51   : > { %639 = vpow2.f32 %v274_v25 }
  0x52   : > { %v400_v4 = vsel %vm374_vm5, %v396_v21, 0.0 }
  0x5e   : > { %v640_v31 = vpop.eup %639 }
  0x5f   : > { %v277_v32 = vcombine.high %v640_v31, %v640_v31  ;;  %v279_v33 = vsel %vm254_vm1, %v640_v31, 0.0 }
  0x60   : > { %v280_v34 = vrot.slane %v279_v33, 4 }
  0x61   : > { %v286_v36 = vsel %vm254_vm1, %v277_v32, 0.0 }
  0x62   : > { %v281_v37 = vadd.f32 %v280_v34, %v279_v33  ;;  %v287_v38 = vrot.slane %v286_v36, 4 }
  0x64   : > { %v282_v41 = vrot.slane %v281_v37, 2  ;;  %v288_v42 = vadd.f32 %v287_v38, %v286_v36 }
  0x66   : > { %v283_v44 = vadd.f32 %v282_v41, %v281_v37  ;;  %v289_v45 = vrot.slane %v288_v42, 2 }
  0x68   : > { %v284_v47 = vrot.slane %v283_v44, 1  ;;  %v290_v48 = vadd.f32 %v289_v45, %v288_v42 }
  0x6a   : > { %v285_v50 = vadd.f32 %v284_v47, %v283_v44  ;;  %v291_v51 = vrot.slane %v290_v48, 1 }
  0x6c   : > { %v292_v53 = vadd.f32 %v291_v51, %v290_v48  ;;  %641 = vlog2.f32 %v285_v50 }
  0x6e   : > { %643 = vlog2.f32 %v292_v53 }
  0x79   : > { %v642_v63 = vpop.eup %641 }
  0x7a   : > { %v294_v0 = vmul.f32 0.6931472, %v642_v63 }
  0x7b   : > { %v644_v3 = vpop.eup %643 }
  0x7c   : > { %v296_v5 = vmul.f32 0.6931472, %v644_v3  ;;  %v297_v6 = vadd.f32 %v294_v0, %v261_v20  ;;  %v392_v20 = vrot.slane %v387_v19, %v953_v27 }
  0x7e   : > { %v298_v9 = vadd.f32 %v296_v5, %v268_v22  ;;  %v325_v10 = vsub.f32 %v297_v6, %v317_v2  ;;  %v399_v30 = vsel %vm374_vm5, %v392_v20, 0.0 }
  0x7f   : > { %v401_v32 = vadd.f32 %v400_v4, %v399_v30 }
  0x80   : > { %v326_v11 = vsub.f32 %v298_v9, %v324_v7 }
  0x82   : > { %v331_v13 = vcombine.low %v325_v10, %v326_v11 }
  0x84   : > { %v338_v14 = vrot.slane %v331_v13, %v337_v12 }
  0x86   : > { %v345_v16 = vrot.slane %v338_v14, %v337_v12 }
  0x88   : > { %v347_v17 = vsel %vm327_vm2, %v345_v16, 0.0 }
  0x89   : > { %v348_v18 = vadd.f32 %v347_v17, %v328_v15 }
  0x8b   : > { %353 = vst.msk [vmem:[#allocation2] sm:$0x3] %vm933_vm0, %v348_v18 }
  0x92   : > { %v362_v22 = vld [vmem:[#allocation2] sm:$0x3] }
  0x93   : > { %v367_v23 = vrot.slane %v362_v22, %v953_v27  ;;  %v371_v24 = vrot.slane %v362_v22, %v956_v28 }
  0x95   : > { %v375_v25 = vsel %vm374_vm5, %v367_v23, 0.0  ;;  %v376_v29 = vsel %vm374_vm5, %v371_v24, 0.0 }
  0x96   : > { %v377_v31 = vadd.f32 %v376_v29, %v375_v25 }
  0x98   : > { %378 = vadd.xlane.f32.xlu0 %v377_v31 }
  0x9c   : > { %402 = vadd.xlane.f32.xlu0 %v401_v32 }
 0x121   : > { %v379_v1 = vpop.xlane.xlu0 %378 }
 0x122   : > { %v380_v33 = vrot.slane %v379_v1, 4 }
 0x124   : > { %v381_v34 = vadd.f32 %v380_v33, %v379_v1 }
 0x125   : > { %v403_v35 = vpop.xlane.xlu0 %402 }
 0x126   : > { %v382_v36 = vrot.slane %v381_v34, 2  ;;  %v404_v37 = vrot.slane %v403_v35, 4 }
 0x128   : > { %v405_v38 = vadd.f32 %v404_v37, %v403_v35  ;;  %v383_v27 = vadd.f32 %v382_v36, %v381_v34 }
 0x12a   : > { %v406_v39 = vrot.slane %v405_v38, 2  ;;  %v384_v28 = vrot.slane %v383_v27, 1 }
 0x12c   : > { %v407_v40 = vadd.f32 %v406_v39, %v405_v38  ;;  %v385_v41 = vadd.f32 %v384_v28, %v383_v27 }
 0x12e   : > { %565 = vpush %v385_v41  ;;  %v408_v42 = vrot.slane %v407_v40, 1 }
 0x130   : > { %v409_v43 = vadd.f32 %v408_v42, %v407_v40 }
 0x132   : > { %567 = vpush %v409_v43 }
 0x15f   : > { %s566_s26 = spop %565 }
 0x160   : > { %v412_v44 = vstv %s566_s26 }
 0x163   : > { %s568_s29 = spop %567 }
 0x164   : > { %v413_v45 = vstv %s568_s29 }
 0x165   : > { %v414_v46 = vsel %vm411_vm6, %v412_v44, %v413_v45 }
 0x166   : > { %415 = vst [vmem:[%s232_s27] sm:$0x3] %v414_v46 }
 0x167   : > { %714 = shalt.err (!%p711_p6)
}
 0x168   : > { %s715_s16 = scalar_lea.hbm %s984_s8, 32  ;;  %s719_s5 = scalar_lea.hbm %s1028_s2, 64 }
 0x169   : > { %p716_p7 = scmp.ne.s32.totalorder %s984_s8, %s715_s16  ;;  %p720_p4 = scmp.lt.s32.totalorder %s984_s8, %s1028_s2 }
 0x16a   : > { %p721_p10 = scmp.lt.s32.totalorder %s719_s5, %s715_s16 }
 0x16b   : > { %p717_p1 = pnand %p716_p7, %p858_p9 }
 0x16c   : > { %p722_p8 = por %p721_p10, %p720_p4 }
 0x16d   : > { %p718_p2 = pneg %p717_p1 }
 0x16f   : > { %p723_p0 = pnand %p722_p8, %p718_p2 }
 0x171   : > { %726 = shalt.err (!%p723_p0)
}
 0x172   : > { %573 = dma.vmem_to_hbm [thread:$0]  (%p858_p9), %s432_s28, 32, %s984_s8, %s417_s30  }
 0x173 PF: > { %s443_s21 = sand.u32 1, %s765_s9   ;;  %p1037_p3 = scmp.ge.s32.totalorder %s785_s14, 2 }
 0x174   : > { %s444_s26 = scalar_lea.sflag [#allocation6], %s443_s21 }
 0x175   : > { %p583_p13 = pnand %p1037_p3, %p865_p11 }
 0x177   : > { %p584_p5 = pneg %p583_p13 }
 0x179   : > { %760 = dma.done.wait (%p584_p5), %s444_s26, 32  }
 0x17a   : > { %762 = vsyncadd (%p584_p5), %s444_s26, 4294967264  ;;  %s21_s14 = sadd.s32 1, %s785_s14   ;;  %s1038_s9 = smov %s769_s10 }
 0x17b   : > { %p18_p12 = scmp.ge.s32.totalorder %s21_s14, 4   ;;  %s1039_s10 = smov %s773_s11 }
 0x17c   : > { %s1040_s11 = smov %s863_s23  ;;  %s1041_s12 = smov %s781_s13 }
 0x17d   : > { %s1042_s13 = smov %s1044_s17  ;;  %20 = sbr.rel (!%p18_p12) target bundleno = 8 (0x8), region = 94 }
 0x182   :  { %449 = vsyncpa [#allocation5], 1 }
 0x183   :  { %451 = vsyncpa [#allocation5 + $0x1], 1 }
 0x184   :  { %452 = vsyncpa [#allocation8], 1 }
 0x185   :  { %454 = vsyncpa [#allocation8 + $0x1], 1 }
 0x186   :  { %455 = vsyncpa [#allocation6], 1 }
 0x187   :  { %457 = vsyncpa [#allocation6 + $0x1], 1 }

</bundles_post_ra>
